<compile_context>
chip_gen: v5e
topology: v5e:2x2
jax: 0.10.0
libtpu: 0.0.40
codegen_flags: <defaults>
</compile_context>

<pallas_src>
import numpy as np
import jax
import jax.numpy as jnp
from jax.experimental import pallas as pl
from jax.experimental.pallas import tpu as pltpu

IN_FEATURES = 84
NUM_CLASSES = 10


# ----------------------------------------------------------------------------
# Deterministic parameter construction (mirrors RBFLayer.generate_centers)
# ----------------------------------------------------------------------------
def _create_digit_bitmap(digit: int) -> np.ndarray:
    bitmap = np.zeros((7, 12), dtype=np.float32)
    if digit == 0:
        bitmap[1:6, 1:11] = 1.0
    elif digit == 1:
        bitmap[:, 6] = 1.0
    # digits 2..9 stay all-zero, exactly like the reference module
    return bitmap


def generate_centers(in_features: int = IN_FEATURES,
                     num_classes: int = NUM_CLASSES) -> jnp.ndarray:
    centers = np.zeros((num_classes, in_features), dtype=np.float32)
    for d in range(num_classes):
        centers[d] = _create_digit_bitmap(d).reshape(-1)
    return jnp.asarray(centers)


def _round_up(n: int, m: int) -> int:
    return ((n + m - 1) // m) * m


# ----------------------------------------------------------------------------
# Pallas kernel: squared-Euclidean distance via ||x||^2 + ||c||^2 - 2 x c^T
# ----------------------------------------------------------------------------
def rbf_distance_kernel(x_ref, ct_ref, cn_ref, o_ref):
    x = x_ref[...]                      # (TB, 84)       f32 batch tile
    ct = ct_ref[...]                    # (84, C_pad)    f32, (-2 * centers)^T, resident
    cn = cn_ref[...]                    # (1, C_pad)     f32, precomputed ||c||^2

    # Row norms: one lane reduction per row of the tile (VPU/XLU, B work not B*C).
    x_norm = jnp.sum(x * x, axis=1, keepdims=True)              # (TB, 1)

    # Cross term on the MXU (already scaled by -2 via ct). K=84, N=128 tile.
    xc = jnp.dot(x, ct, preferred_element_type=jnp.float32)     # (TB, C_pad)

    # Squared distances on the full lane-aligned tile; clamp tiny negatives
    # from cancellation, then store only the real class columns (narrow output).
    dist = jnp.maximum(x_norm + cn + xc, 0.0)                   # (TB, C_pad)
    o_ref[...] = dist[:, : o_ref.shape[1]]                      # (TB, C)


def _pick_batch_tile(B: int) -> int:
    """Batch tile: big enough to amortize per-step overhead, >=2 blocks for
    larger B so both v7x TensorCores get grid work, capped at 2048 rows
    (~0.7 MiB/step of x, comfortably inside every generation's scoped VMEM)."""
    B_r = _round_up(max(B, 8), 8)
    if B_r <= 256:
        return B_r                                   # single tiny block
    return min(2048, _round_up((B_r + 1) // 2, 8))   # >=2 blocks, cap at 2048


def rbf_layer(x: jnp.ndarray, centers: jnp.ndarray) -> jnp.ndarray:
    """x: (B, in_features) f32 -> (B, num_classes) f32 squared distances."""
    B, F = x.shape
    C, Fc = centers.shape
    assert F == Fc, "feature dim mismatch"

    x = x.astype(jnp.float32)
    centers = centers.astype(jnp.float32)

    # Class dim of the (tiny, constant) operands padded to a full lane width.
    C_pad = _round_up(C, 128)                                    # 10 -> 128

    # (-2 * centers)^T, zero-padded along the class dim: (F, C_pad).
    ct_scaled = jnp.pad(-2.0 * centers, ((0, C_pad - C), (0, 0))).T

    # ||c||^2 precomputed once (constant-folds when centers are constants).
    c_norm = jnp.sum(centers * centers, axis=1)                  # (C,)
    c_norm = jnp.pad(c_norm, (0, C_pad - C)).reshape(1, C_pad)   # (1, C_pad)

    TB = _pick_batch_tile(B)
    grid = (pl.cdiv(B, TB),)    # partial last block: Pallas masks OOB writes

    return pl.pallas_call(
        rbf_distance_kernel,
        out_shape=jax.ShapeDtypeStruct((B, C), jnp.float32),     # narrow output
        grid=grid,
        in_specs=[
            pl.BlockSpec((TB, F), lambda i: (i, 0)),        # x tile, native F=84
            pl.BlockSpec((F, C_pad), lambda i: (0, 0)),     # (-2*centers)^T resident
            pl.BlockSpec((1, C_pad), lambda i: (0, 0)),     # center norms resident
        ],
        out_specs=pl.BlockSpec((TB, C), lambda i: (i, 0)),  # (TB, 10) narrow block
        compiler_params=pltpu.CompilerParams(
            dimension_semantics=("parallel",),              # megacore-shardable
        ),
    )(x, ct_scaled, c_norm)


# ----------------------------------------------------------------------------
# Pure-JAX reference for correctness checking (matches torch broadcasting)
# ----------------------------------------------------------------------------
def rbf_layer_ref(x: jnp.ndarray, centers: jnp.ndarray) -> jnp.ndarray:
    diff = x[:, None, :] - centers[None, :, :]
    return jnp.sum(diff * diff, axis=2)


if __name__ == "__main__":
    key = jax.random.PRNGKey(0)
    centers = generate_centers(IN_FEATURES, NUM_CLASSES)

    # Small batch (LeNet-style), plus a non-multiple batch that exercises the
    # cdiv grid / masked partial final block.
    for B in (8, 300):
        key, sub = jax.random.split(key)
        x = jax.random.normal(sub, (B, IN_FEATURES), dtype=jnp.float32)

        out = rbf_layer(x, centers)
        out = jax.block_until_ready(out)

        ref = rbf_layer_ref(x, centers)
        assert out.shape == (B, NUM_CLASSES), out.shape
        assert out.dtype == jnp.float32, out.dtype
        np.testing.assert_allclose(np.asarray(out), np.asarray(ref),
                                   rtol=1e-4, atol=1e-3)

    print("KERNEL_OK")
</pallas_src>

<mosaic_0001>
module attributes {stable_mosaic.version = 11 : i64} {
  func.func @rbf_distance_kernel(%arg0: i32, %arg1: memref<8x84xf32, #tpu.memory_space<vmem>>, %arg2: memref<84x128xf32, #tpu.memory_space<vmem>>, %arg3: memref<1x128xf32, #tpu.memory_space<vmem>>, %arg4: memref<8x10xf32, #tpu.memory_space<vmem>>) attributes {dimension_semantics = [#tpu.dimension_semantics<parallel>], iteration_bounds = array<i64: 1>, scalar_prefetch = 0 : i64, scratch_operands = 0 : i64, tpu.core_type = #tpu.core_type<tc>, window_params = [{transform_indices = @transform_0, window_bounds = array<i64: 8, 84>}, {pipeline_mode = #tpu.pipeline_mode<synchronous>, transform_indices = @transform_1, window_bounds = array<i64: 84, 128>}, {pipeline_mode = #tpu.pipeline_mode<synchronous>, transform_indices = @transform_2, window_bounds = array<i64: 1, 128>}, {transform_indices = @transform_3, window_bounds = array<i64: 8, 10>}]} {
    %c0 = arith.constant 0 : index
    %c0_0 = arith.constant 0 : index
    %0 = vector.load %arg1[%c0, %c0_0] : memref<8x84xf32, #tpu.memory_space<vmem>>, vector<8x84xf32>
    %c0_1 = arith.constant 0 : index
    %c0_2 = arith.constant 0 : index
    %1 = vector.load %arg2[%c0_1, %c0_2] : memref<84x128xf32, #tpu.memory_space<vmem>>, vector<84x128xf32>
    %c0_3 = arith.constant 0 : index
    %c0_4 = arith.constant 0 : index
    %2 = vector.load %arg3[%c0_3, %c0_4] : memref<1x128xf32, #tpu.memory_space<vmem>>, vector<1x128xf32>
    %3 = arith.mulf %0, %0 : vector<8x84xf32>
    %cst = arith.constant dense<0.000000e+00> : vector<8xf32>
    %4 = vector.multi_reduction <add>, %3, %cst [1] : vector<8x84xf32> to vector<8xf32>
    %5 = vector.shape_cast %4 : vector<8xf32> to vector<8x1xf32>
    %cst_5 = arith.constant dense<0.000000e+00> : vector<8x128xf32>
    %6 = tpu.matmul %0, %1, %cst_5 {dimension_numbers = #tpu.dot_dimension_numbers<[1], [0], [0], [1], [0, 0, 1, 1], [], []>} : vector<8x84xf32>, vector<84x128xf32>, vector<8x128xf32> -> vector<8x128xf32>
    %7 = vector.broadcast %5 : vector<8x1xf32> to vector<8x128xf32>
    %8 = vector.broadcast %2 : vector<1x128xf32> to vector<8x128xf32>
    %9 = arith.addf %7, %8 : vector<8x128xf32>
    %10 = arith.addf %9, %6 : vector<8x128xf32>
    %cst_6 = arith.constant 0.000000e+00 : f32
    %11 = vector.broadcast %cst_6 : f32 to vector<8x128xf32>
    %12 = arith.maximumf %10, %11 : vector<8x128xf32>
    %13 = vector.extract_strided_slice %12 {offsets = [0, 0], sizes = [8, 10], strides = [1, 1]} : vector<8x128xf32> to vector<8x10xf32>
    %c0_7 = arith.constant 0 : index
    %c0_8 = arith.constant 0 : index
    %14 = vector.load %arg4[%c0_7, %c0_8] : memref<8x10xf32, #tpu.memory_space<vmem>>, vector<8x10xf32>
    tpu.vector_store %arg4[%c0_7, %c0_8], %13 {strides = array<i32>} : memref<8x10xf32, #tpu.memory_space<vmem>>, vector<8x10xf32>,
    return
  }
  func.func @transform_0(%arg0: i32) -> (i32, i32) {
    %c0_i32 = arith.constant 0 : i32
    %c0_i32_0 = arith.constant 0 : i32
    return %arg0, %c0_i32 : i32, i32
  }
  func.func @transform_1(%arg0: i32) -> (i32, i32) {
    %c0_i32 = arith.constant 0 : i32
    %c0_i32_0 = arith.constant 0 : i32
    %c0_i32_1 = arith.constant 0 : i32
    return %c0_i32, %c0_i32_0 : i32, i32
  }
  func.func @transform_2(%arg0: i32) -> (i32, i32) {
    %c0_i32 = arith.constant 0 : i32
    %c0_i32_0 = arith.constant 0 : i32
    %c0_i32_1 = arith.constant 0 : i32
    return %c0_i32, %c0_i32_0 : i32, i32
  }
  func.func @transform_3(%arg0: i32) -> (i32, i32) {
    %c0_i32 = arith.constant 0 : i32
    %c0_i32_0 = arith.constant 0 : i32
    return %arg0, %c0_i32 : i32, i32
  }
}

</mosaic_0001>

<bundles_post_ra>
// kernel: tpu_custom_call.1
= control target key start
LH: loop header
LB: loop body
LE: loop exit
PB: predicated region body
PF: predicated region fallthrough
CT: control target
= control target key end

     0   :  { %8 = vsyncpa [#allocation3], 0  ;;  %s241_s0 = inlined_call_operand.hbm [shape: f32[8,84], index: 0, kind: input, shape index: {}]   ;;  %s242_s1 = inlined_call_operand.hbm [shape: f32[84,128], index: 1, kind: input, shape index: {}]   ;;  %s243_s2 = inlined_call_operand.vmem [shape: f32[1,128], index: 2, kind: input, shape index: {}]   ;;  %s244_s3 = inlined_call_operand.hbm [shape: f32[8,10], index: 3, kind: output, shape index: {}]  }
   0x1   :  { %9 = vsyncpa [#allocation6], 0 }
   0x2   :  { %10 = vsyncpa [#allocation4], 0  ;;  %s16_s14 = sshll.u32 %s241_s0, 4  ;;  %s202_s15 = smov [#allocation2]   ;;  %s17_s14 = int_to_ptr.hbm [resolvable:$true] %s16_s14 }
   0x3   :  { %s18_s16 = sshll.u32 %s202_s15, 4  ;;  %s26_s19 = sshll.u32 %s242_s1, 4  ;;  %s19_s16 = int_to_ptr.vmem [resolvable:$true] %s18_s16  ;;  %s27_s19 = int_to_ptr.hbm [resolvable:$true] %s26_s19 }
   0x4   :  { %21 = dma.hbm_to_vmem [thread:$0]  %s17_s14, 128, %s19_s16, [#allocation3]  }
   0x5   :  { %s203_s20 = smov [#allocation5]   ;;  %s204_s22 = smov 128  }
   0x6   :  { %s28_s21 = sshll.u32 %s203_s20, 4  ;;  %s205_s23 = smov 8   ;;  %s29_s21 = int_to_ptr.vmem [resolvable:$true] %s28_s21 }
   0x7   :  { %34 = dma.hbm_to_vmem [thread:$0]  %s27_s19, 1408, %s29_s21, [#allocation6], %s204_s22, %s204_s22, %s205_s23  }
   0x8   :  { %196 = dma.done.wait [#allocation3], 128  }
   0x9   :  { %197 = vsyncadd [#allocation3], 4294967168 }
   0xa   :  { %198 = dma.done.wait [#allocation6], 1408  }
   0xb   :  { %199 = vsyncadd [#allocation6], 4294965888  ;;  %vm66_vm0 = vcmask 1043456   ;;  %v56_v0 = vld [vmem:[#allocation5 + $0x50] sm:$0xf]  ;;  %v55_v1 = vld [vmem:[#allocation5 + $0x48] sm:$0xff] }
   0xc   :  { %116 = vmatpush.msk.msra.mxu0 %vm66_vm0, %v56_v0  ;;  %v54_v2 = vld [vmem:[#allocation5 + $0x40] sm:$0xff]  ;;  %v45_v3 = vld [vmem:[#allocation2] sm:$0xff]  ;;  %vm59_vm1 = vcmask 687104   ;;  %v52_v6 = vld [vmem:[#allocation5 + $0x30] sm:$0xff]  ;;  %s206_s24 = smov [#allocation7]   ;;  %s105_s28 = sshll.u32 %s244_s3, 4  ;;  %s106_s28 = int_to_ptr.hbm [resolvable:$true] %s105_s28 }
   0xd   :  { %v53_v4 = vld [vmem:[#allocation5 + $0x38] sm:$0xff]  ;;  %v58_v5 = vmul.f32 %v45_v3, %v45_v3  ;;  %v51_v8 = vld [vmem:[#allocation5 + $0x28] sm:$0xff]  ;;  %v50_v9 = vld [vmem:[#allocation5 + $0x20] sm:$0xff]  ;;  %s103_s25 = sshll.u32 %s206_s24, 4  ;;  %vm96_vm2 = vcmask 80896   ;;  %s104_s25 = int_to_ptr.vmem [resolvable:$true] %s103_s25 }
   0xe   :  { %76 = vmatpush.msra.mxu0 %v55_v1  ;;  %v49_v10 = vld [vmem:[#allocation5 + $0x18] sm:$0xff]  ;;  %v48_v11 = vld [vmem:[#allocation5 + $0x10] sm:$0xff]  ;;  %v47_v12 = vld [vmem:[#allocation5 + $0x8] sm:$0xff] }
   0xf   :  { %v60_v7 = vsel %vm59_vm1, %v58_v5, 0.0  ;;  %v46_v13 = vld [vmem:[#allocation5] sm:$0xff]  ;;  %v123_v14 = vld [vmem:[%s243_s2] ss:$0 sm:$0xff] }
  0x10   :  { %77 = vmatpush.msra.mxu0 %v54_v2  ;;  %61 = vadd.xlane.f32.xlu0 %v60_v7 }
  0x12   :  { %78 = vmatpush.msra.mxu0 %v53_v4 }
  0x14   :  { %79 = vmatpush.msra.mxu0 %v52_v6 }
  0x16   :  { %80 = vmatpush.msra.mxu0 %v51_v8 }
  0x18   :  { %81 = vmatpush.msra.mxu0 %v50_v9 }
  0x1a   :  { %82 = vmatpush.msra.mxu0 %v49_v10 }
  0x1c   :  { %83 = vmatpush.msra.mxu0 %v48_v11 }
  0x1e   :  { %84 = vmatpush.msra.mxu0 %v47_v12 }
  0x20   :  { %85 = vmatpush.msra.mxu0 %v46_v13 }
  0x21   :  { %117 = vmatmul.msk.f32.vlgmr.msra.gmra.mxu0 %vm59_vm1, %v45_v3 }
  0x83   :  { %v62_v15 = vpop.xlane.xlu0 %61 }
  0x84   :  { %v93_v16 = vadd.f32 %v123_v14, %v62_v15 }
  0x9e   :  { %v87_v17 = vpop.f32.mrf.mxu0 }
  0x9f   :  { %v94_v18 = vadd.f32 %v93_v16, %v87_v17 }
  0xa1   :  { %v95_v19 = vmax.f32 %v94_v18, 0.0 }
  0xa3   :  { %97 = vst.msk [vmem:[#allocation7] sm:$0xff] %vm96_vm2, %v95_v19 }
  0xa4   :  { %108 = dma.vmem_to_hbm [thread:$0]  %s104_s25, 128, %s106_s28, [#allocation4]  }
  0xa5   :  { %200 = dma.done.wait [#allocation4], 128  }
  0xa6   :  { %201 = vsyncadd [#allocation4], 4294967168 }
  0xa7   :  { %113 = vsyncpa [#allocation3], 1 }
  0xa8   :  { %114 = vsyncpa [#allocation6], 1 }
  0xa9   :  { %115 = vsyncpa [#allocation4], 1 }

</bundles_post_ra>
